<compile_context>
chip_gen: v5e
topology: v5e:2x2
jax: 0.10.0
libtpu: 0.0.40
codegen_flags: <defaults>
</compile_context>

<pallas_src>
import jax
import jax.numpy as jnp
from jax import lax
from jax.experimental import pallas as pl
from jax.experimental.pallas import tpu as pltpu

LANE = 128


def _round_up(v, m):
    return ((v + m - 1) // m) * m


def gcn_dialog_kernel(a_ref, x_ref, w_ref, b_ref, wc_ref, bc_ref, o_ref):
    """One grid step == the whole forward for one (node-padded) graph.

    a_ref : (Np, Np)   bf16 normalized adjacency (zero rows/cols for padding)
    x_ref : (Np, H)    bf16 input features (zero rows for padding)
    w_ref : (L, H, H)  bf16 per-layer GCN weights, (in, out) layout
    b_ref : (L, 1, H)  f32  per-layer GCN biases
    wc_ref: (H, Op)    bf16 classifier weight (lane-padded to 128)
    bc_ref: (1, Op)    f32  classifier bias (lane-padded)
    o_ref : (Np, Op)   f32  logits (padded; sliced in the wrapper)
    """
    a = a_ref[...]          # (Np, Np) bf16
    x = x_ref[...]          # (Np, H)  bf16
    n_layers = w_ref.shape[0]

    def layer_body(l, h):
        # dropout(h) -> identity (eval mode)
        # GCNConv: A_norm @ (h @ W_l) + b_l, then ReLU.  f32 accumulation.
        xw = jnp.dot(h, w_ref[l], preferred_element_type=jnp.float32)
        agg = jnp.dot(a, xw.astype(jnp.bfloat16),
                      preferred_element_type=jnp.float32)
        agg = agg + b_ref[l]                       # (1, H) f32 bias broadcast
        return jnp.maximum(agg, 0.0).astype(jnp.bfloat16)

    h = lax.fori_loop(0, n_layers, layer_body, x, unroll=True)

    # Residual add directly in bf16 (both operands are already bf16), then the
    # lane-dense classifier matmul with f32 accumulation + bias.
    z = h + x
    o_ref[...] = (
        jnp.dot(z, wc_ref[...], preferred_element_type=jnp.float32) + bc_ref[...]
    )


def prepare_gcn_dialog_params(w_all, b_all, wc, bc):
    """One-time (model-load) weight padding/casting, hoisted out of the call path."""
    layers, hid, hid2 = w_all.shape
    assert hid == hid2, "GCN hidden weights must be square"
    out_size = wc.shape[1]
    o_pad = _round_up(max(out_size, 1), LANE)  # lane-dense (unmasked) output store

    w_bf = w_all.astype(jnp.bfloat16)
    b_f32 = b_all.reshape(layers, 1, hid).astype(jnp.float32)
    wc_bf = jnp.zeros((hid, o_pad), jnp.bfloat16).at[:, :out_size].set(
        wc.astype(jnp.bfloat16))
    bc_f32 = jnp.zeros((1, o_pad), jnp.float32).at[:, :out_size].set(
        bc.reshape(1, out_size).astype(jnp.float32))
    return dict(w=w_bf, b=b_f32, wc=wc_bf, bc=bc_f32,
                layers=layers, hidden=hid, out_size=out_size, o_pad=o_pad)


def pad_graph_inputs(x, a_norm):
    """Pad a batch of graphs to the MXU node tile, casting straight to bf16."""
    b, n, hid = x.shape
    n_pad = _round_up(max(n, 1), LANE)
    # TODO(synk): on v6e/v7x pack two 128-padded graphs per grid step (M=256)
    # to fill the 256-wide MXU; M=128 already fills v5e's 128-wide MXU.
    a_p = jnp.zeros((b, n_pad, n_pad), jnp.bfloat16).at[:, :n, :n].set(
        a_norm.astype(jnp.bfloat16))
    x_p = jnp.zeros((b, n_pad, hid), jnp.bfloat16).at[:, :n, :].set(
        x.astype(jnp.bfloat16))
    return x_p, a_p, n_pad


def gcn_for_dialog_forward(x, a_norm, params):
    """Full GCNForDialog forward for a batch of graphs in one pallas_call.

    x      : (B, N, H) f32 node features per graph
    a_norm : (B, N, N) f32 normalized adjacency per graph
    params : output of prepare_gcn_dialog_params
    """
    batch, n, hid = x.shape
    assert hid == params["hidden"], "residual requires input_size == hidden_size"
    layers = params["layers"]
    out_size = params["out_size"]
    o_pad = params["o_pad"]
    assert layers >= 1

    x_p, a_p, n_pad = pad_graph_inputs(x, a_norm)

    # VMEM budget: double-buffered per-graph tiles + single-buffered weights,
    # plus headroom for the f32 intermediates inside the layer loop.
    per_graph_bytes = n_pad * n_pad * 2 + n_pad * hid * 2 + n_pad * o_pad * 4
    weight_bytes = (layers * hid * hid * 2 + layers * hid * 4
                    + hid * o_pad * 2 + o_pad * 4)
    scratch_bytes = 4 * n_pad * max(hid, o_pad) * 4
    vmem_limit = int(min(
        max(2 * per_graph_bytes + weight_bytes + scratch_bytes + (4 << 20),
            16 << 20),
        100 << 20))

    flops = batch * (2 * layers * (n_pad * hid * hid + n_pad * n_pad * hid)
                     + 2 * n_pad * hid * o_pad)
    bytes_accessed = (a_p.size * 2 + x_p.size * 2 + weight_bytes
                      + batch * n_pad * o_pad * 4)

    out_p = pl.pallas_call(
        gcn_dialog_kernel,
        out_shape=jax.ShapeDtypeStruct((batch, n_pad, o_pad), jnp.float32),
        grid_spec=pltpu.PrefetchScalarGridSpec(
            num_scalar_prefetch=0,
            grid=(batch,),
            in_specs=[
                # Per-graph tiles: indexed by the batch grid axis, pipelined.
                pl.BlockSpec((None, n_pad, n_pad), lambda g: (g, 0, 0)),   # A_norm
                pl.BlockSpec((None, n_pad, hid), lambda g: (g, 0, 0)),     # x
                # Grid-invariant weight tiles: single-buffered (no wasted VMEM).
                pl.BlockSpec((layers, hid, hid), lambda g: (0, 0, 0),
                             pipeline_mode=pl.Buffered(1)),                # all W
                pl.BlockSpec((layers, 1, hid), lambda g: (0, 0, 0),
                             pipeline_mode=pl.Buffered(1)),                # all b
                pl.BlockSpec((hid, o_pad), lambda g: (0, 0),
                             pipeline_mode=pl.Buffered(1)),                # wc
                pl.BlockSpec((1, o_pad), lambda g: (0, 0),
                             pipeline_mode=pl.Buffered(1)),                # bc
            ],
            out_specs=pl.BlockSpec((None, n_pad, o_pad), lambda g: (g, 0, 0)),
        ),
        compiler_params=pltpu.CompilerParams(
            # Graph axis is independent -> shards across v7x's 2 TensorCores.
            dimension_semantics=("parallel",),
            vmem_limit_bytes=vmem_limit,
        ),
        cost_estimate=pl.CostEstimate(
            flops=int(flops),
            transcendentals=0,
            bytes_accessed=int(bytes_accessed)),
    )(a_p, x_p, params["w"], params["b"], params["wc"], params["bc"])

    # TODO(synk): for large graphs (resident bf16 A hits v7x's 64 MiB VMEM at
    # Np ~ 4k), row-tile A as (tile, Np) blocks on a "parallel" node axis and
    # keep h/xw in VMEM scratch instead of the dense (Np, Np) A block.
    # TODO(synk): on v7x at large Np, optionally quantize the A @ xw operands
    # to fp8 e4m3 (per-tensor scale, f32 accumulation) for ~2x MXU rate.
    return out_p[:, :n, :out_size], {}


def build_norm_adj(edge_index, num_nodes):
    """Dense GCN normalization: D^-1/2 (A + I) D^-1/2 (plain-JAX glue)."""
    src = edge_index[0]
    dst = edge_index[1]
    adj = jnp.zeros((num_nodes, num_nodes), jnp.float32)
    # A[target, source] = 1 for each (source -> target) edge, plus self loops.
    # edge_index is assumed symmetrized (undirected), matching PyG usage here.
    adj = adj.at[dst, src].add(1.0)
    adj = adj + jnp.eye(num_nodes, dtype=jnp.float32)
    deg = jnp.sum(adj, axis=1)
    dinv = jnp.where(deg > 0, 1.0 / jnp.sqrt(deg), 0.0)
    return adj * dinv[:, None] * dinv[None, :]


def reference_forward(x, a_norm, w_all, b_all, wc, bc):
    """Pure-JAX f32 reference (single graph) for correctness checking."""
    h = x
    for l in range(w_all.shape[0]):
        h = a_norm @ (h @ w_all[l]) + b_all[l]
        h = jnp.maximum(h, 0.0)
    return (h + x) @ wc + bc


if __name__ == "__main__":
    # Small shapes consistent with the module: residual requires
    # input_size == hidden_size.  Two dialog graphs are batched per call.
    batch = 2
    num_nodes = 16
    hidden_size = 32
    input_size = hidden_size
    layers = 4
    out_size = 4

    key = jax.random.PRNGKey(0)
    kx, kw, kb, kwc, kbc = jax.random.split(key, 5)

    x = jax.random.normal(kx, (batch, num_nodes, input_size), dtype=jnp.float32)

    w_all = jax.random.normal(kw, (layers, hidden_size, hidden_size),
                              dtype=jnp.float32) * (1.0 / jnp.sqrt(hidden_size))
    b_all = jax.random.normal(kb, (layers, hidden_size), dtype=jnp.float32) * 0.01
    wc = jax.random.normal(kwc, (hidden_size, out_size),
                           dtype=jnp.float32) * (1.0 / jnp.sqrt(hidden_size))
    bc = jax.random.normal(kbc, (1, out_size), dtype=jnp.float32) * 0.01

    # Deterministic undirected edge set: ring graph over the dialog turns,
    # shared by both graphs in the batch.
    src = jnp.arange(num_nodes, dtype=jnp.int32)
    dst = (src + 1) % num_nodes
    edge_index = jnp.stack(
        [jnp.concatenate([src, dst]), jnp.concatenate([dst, src])], axis=0
    )
    a_norm_single = build_norm_adj(edge_index, num_nodes)
    a_norm = jnp.broadcast_to(
        a_norm_single, (batch, num_nodes, num_nodes)).astype(jnp.float32)

    # One-time weight preparation (model load), then the batched forward.
    params = prepare_gcn_dialog_params(w_all, b_all, wc, bc)
    out, aux = gcn_for_dialog_forward(x, a_norm, params)
    out = jax.block_until_ready(out)

    ref = jnp.stack([
        reference_forward(x[g], a_norm[g], w_all, b_all, wc, bc)
        for g in range(batch)
    ])
    assert out.shape == (batch, num_nodes, out_size)
    # bf16 MXU operands (A, h, W) over 4 layers vs. a pure-f32 reference bound
    # accuracy to roughly 1e-2 typical / few e-2 tail; 5e-2 is a safe, much
    # tighter bound than the old 1e-1 and still catches real bugs.
    assert jnp.allclose(out, ref, atol=5e-2, rtol=5e-2), "mismatch vs reference"

    print("KERNEL_OK")
</pallas_src>

<mosaic_0001>
module attributes {stable_mosaic.version = 11 : i64} {
  func.func @gcn_dialog_kernel(%arg0: i32, %arg1: memref<1x128x128xbf16, #tpu.memory_space<vmem>>, %arg2: memref<1x128x32xbf16, #tpu.memory_space<vmem>>, %arg3: memref<4x32x32xbf16, #tpu.memory_space<vmem>>, %arg4: memref<4x1x32xf32, #tpu.memory_space<vmem>>, %arg5: memref<32x128xbf16, #tpu.memory_space<vmem>>, %arg6: memref<1x128xf32, #tpu.memory_space<vmem>>, %arg7: memref<1x128x128xf32, #tpu.memory_space<vmem>>) attributes {dimension_semantics = [#tpu.dimension_semantics<parallel>], iteration_bounds = array<i64: 2>, scalar_prefetch = 0 : i64, scratch_operands = 0 : i64, tpu.core_type = #tpu.core_type<tc>, window_params = [{transform_indices = @transform_0, window_bounds = array<i64: 1, 128, 128>}, {transform_indices = @transform_1, window_bounds = array<i64: 1, 128, 32>}, {pipeline_mode = #tpu.pipeline_mode<synchronous>, transform_indices = @transform_2, window_bounds = array<i64: 4, 32, 32>}, {pipeline_mode = #tpu.pipeline_mode<synchronous>, transform_indices = @transform_3, window_bounds = array<i64: 4, 1, 32>}, {pipeline_mode = #tpu.pipeline_mode<synchronous>, transform_indices = @transform_4, window_bounds = array<i64: 32, 128>}, {pipeline_mode = #tpu.pipeline_mode<synchronous>, transform_indices = @transform_5, window_bounds = array<i64: 1, 128>}, {transform_indices = @transform_6, window_bounds = array<i64: 1, 128, 128>}]} {
    %c0 = arith.constant 0 : index
    %c0_0 = arith.constant 0 : index
    %c0_1 = arith.constant 0 : index
    %0 = vector.load %arg1[%c0, %c0_0, %c0_1] : memref<1x128x128xbf16, #tpu.memory_space<vmem>>, vector<1x128x128xbf16>
    %1 = vector.shape_cast %0 : vector<1x128x128xbf16> to vector<128x128xbf16>
    %c0_2 = arith.constant 0 : index
    %c0_3 = arith.constant 0 : index
    %c0_4 = arith.constant 0 : index
    %2 = vector.load %arg2[%c0_2, %c0_3, %c0_4] : memref<1x128x32xbf16, #tpu.memory_space<vmem>>, vector<1x128x32xbf16>
    %3 = vector.shape_cast %2 : vector<1x128x32xbf16> to vector<128x32xbf16>
    %c0_i32 = arith.constant 0 : i32
    %4 = arith.index_cast %c0_i32 : i32 to index
    %c0_5 = arith.constant 0 : index
    %c0_6 = arith.constant 0 : index
    %5 = vector.load %arg3[%4, %c0_5, %c0_6] : memref<4x32x32xbf16, #tpu.memory_space<vmem>>, vector<1x32x32xbf16>
    %6 = vector.shape_cast %5 : vector<1x32x32xbf16> to vector<32x32xbf16>
    %cst = arith.constant dense<0.000000e+00> : vector<128x32xf32>
    %7 = tpu.matmul %3, %6, %cst {dimension_numbers = #tpu.dot_dimension_numbers<[1], [0], [0], [1], [0, 0, 1, 1], [], []>} : vector<128x32xbf16>, vector<32x32xbf16>, vector<128x32xf32> -> vector<128x32xf32>
    %8 = arith.truncf %7 : vector<128x32xf32> to vector<128x32xbf16>
    %cst_7 = arith.constant dense<0.000000e+00> : vector<128x32xf32>
    %9 = tpu.matmul %1, %8, %cst_7 {dimension_numbers = #tpu.dot_dimension_numbers<[1], [0], [0], [1], [0, 0, 1, 1], [], []>} : vector<128x128xbf16>, vector<128x32xbf16>, vector<128x32xf32> -> vector<128x32xf32>
    %10 = arith.index_cast %c0_i32 : i32 to index
    %c0_8 = arith.constant 0 : index
    %c0_9 = arith.constant 0 : index
    %11 = vector.load %arg4[%10, %c0_8, %c0_9] : memref<4x1x32xf32, #tpu.memory_space<vmem>>, vector<1x1x32xf32>
    %12 = vector.shape_cast %11 : vector<1x1x32xf32> to vector<1x32xf32>
    %13 = vector.broadcast %12 : vector<1x32xf32> to vector<128x32xf32>
    %14 = arith.addf %9, %13 : vector<128x32xf32>
    %cst_10 = arith.constant 0.000000e+00 : f32
    %15 = vector.broadcast %cst_10 : f32 to vector<128x32xf32>
    %16 = arith.maximumf %14, %15 : vector<128x32xf32>
    %17 = arith.truncf %16 : vector<128x32xf32> to vector<128x32xbf16>
    %c1_i32 = arith.constant 1 : i32
    %18 = arith.index_cast %c1_i32 : i32 to index
    %c0_11 = arith.constant 0 : index
    %c0_12 = arith.constant 0 : index
    %19 = vector.load %arg3[%18, %c0_11, %c0_12] : memref<4x32x32xbf16, #tpu.memory_space<vmem>>, vector<1x32x32xbf16>
    %20 = vector.shape_cast %19 : vector<1x32x32xbf16> to vector<32x32xbf16>
    %cst_13 = arith.constant dense<0.000000e+00> : vector<128x32xf32>
    %21 = tpu.matmul %17, %20, %cst_13 {dimension_numbers = #tpu.dot_dimension_numbers<[1], [0], [0], [1], [0, 0, 1, 1], [], []>} : vector<128x32xbf16>, vector<32x32xbf16>, vector<128x32xf32> -> vector<128x32xf32>
    %22 = arith.truncf %21 : vector<128x32xf32> to vector<128x32xbf16>
    %cst_14 = arith.constant dense<0.000000e+00> : vector<128x32xf32>
    %23 = tpu.matmul %1, %22, %cst_14 {dimension_numbers = #tpu.dot_dimension_numbers<[1], [0], [0], [1], [0, 0, 1, 1], [], []>} : vector<128x128xbf16>, vector<128x32xbf16>, vector<128x32xf32> -> vector<128x32xf32>
    %24 = arith.index_cast %c1_i32 : i32 to index
    %c0_15 = arith.constant 0 : index
    %c0_16 = arith.constant 0 : index
    %25 = vector.load %arg4[%24, %c0_15, %c0_16] : memref<4x1x32xf32, #tpu.memory_space<vmem>>, vector<1x1x32xf32>
    %26 = vector.shape_cast %25 : vector<1x1x32xf32> to vector<1x32xf32>
    %27 = vector.broadcast %26 : vector<1x32xf32> to vector<128x32xf32>
    %28 = arith.addf %23, %27 : vector<128x32xf32>
    %cst_17 = arith.constant 0.000000e+00 : f32
    %29 = vector.broadcast %cst_17 : f32 to vector<128x32xf32>
    %30 = arith.maximumf %28, %29 : vector<128x32xf32>
    %31 = arith.truncf %30 : vector<128x32xf32> to vector<128x32xbf16>
    %c2_i32 = arith.constant 2 : i32
    %32 = arith.index_cast %c2_i32 : i32 to index
    %c0_18 = arith.constant 0 : index
    %c0_19 = arith.constant 0 : index
    %33 = vector.load %arg3[%32, %c0_18, %c0_19] : memref<4x32x32xbf16, #tpu.memory_space<vmem>>, vector<1x32x32xbf16>
    %34 = vector.shape_cast %33 : vector<1x32x32xbf16> to vector<32x32xbf16>
    %cst_20 = arith.constant dense<0.000000e+00> : vector<128x32xf32>
    %35 = tpu.matmul %31, %34, %cst_20 {dimension_numbers = #tpu.dot_dimension_numbers<[1], [0], [0], [1], [0, 0, 1, 1], [], []>} : vector<128x32xbf16>, vector<32x32xbf16>, vector<128x32xf32> -> vector<128x32xf32>
    %36 = arith.truncf %35 : vector<128x32xf32> to vector<128x32xbf16>
    %cst_21 = arith.constant dense<0.000000e+00> : vector<128x32xf32>
    %37 = tpu.matmul %1, %36, %cst_21 {dimension_numbers = #tpu.dot_dimension_numbers<[1], [0], [0], [1], [0, 0, 1, 1], [], []>} : vector<128x128xbf16>, vector<128x32xbf16>, vector<128x32xf32> -> vector<128x32xf32>
    %38 = arith.index_cast %c2_i32 : i32 to index
    %c0_22 = arith.constant 0 : index
    %c0_23 = arith.constant 0 : index
    %39 = vector.load %arg4[%38, %c0_22, %c0_23] : memref<4x1x32xf32, #tpu.memory_space<vmem>>, vector<1x1x32xf32>
    %40 = vector.shape_cast %39 : vector<1x1x32xf32> to vector<1x32xf32>
    %41 = vector.broadcast %40 : vector<1x32xf32> to vector<128x32xf32>
    %42 = arith.addf %37, %41 : vector<128x32xf32>
    %cst_24 = arith.constant 0.000000e+00 : f32
    %43 = vector.broadcast %cst_24 : f32 to vector<128x32xf32>
    %44 = arith.maximumf %42, %43 : vector<128x32xf32>
    %45 = arith.truncf %44 : vector<128x32xf32> to vector<128x32xbf16>
    %c3_i32 = arith.constant 3 : i32
    %46 = arith.index_cast %c3_i32 : i32 to index
    %c0_25 = arith.constant 0 : index
    %c0_26 = arith.constant 0 : index
    %47 = vector.load %arg3[%46, %c0_25, %c0_26] : memref<4x32x32xbf16, #tpu.memory_space<vmem>>, vector<1x32x32xbf16>
    %48 = vector.shape_cast %47 : vector<1x32x32xbf16> to vector<32x32xbf16>
    %cst_27 = arith.constant dense<0.000000e+00> : vector<128x32xf32>
    %49 = tpu.matmul %45, %48, %cst_27 {dimension_numbers = #tpu.dot_dimension_numbers<[1], [0], [0], [1], [0, 0, 1, 1], [], []>} : vector<128x32xbf16>, vector<32x32xbf16>, vector<128x32xf32> -> vector<128x32xf32>
    %50 = arith.truncf %49 : vector<128x32xf32> to vector<128x32xbf16>
    %cst_28 = arith.constant dense<0.000000e+00> : vector<128x32xf32>
    %51 = tpu.matmul %1, %50, %cst_28 {dimension_numbers = #tpu.dot_dimension_numbers<[1], [0], [0], [1], [0, 0, 1, 1], [], []>} : vector<128x128xbf16>, vector<128x32xbf16>, vector<128x32xf32> -> vector<128x32xf32>
    %52 = arith.index_cast %c3_i32 : i32 to index
    %c0_29 = arith.constant 0 : index
    %c0_30 = arith.constant 0 : index
    %53 = vector.load %arg4[%52, %c0_29, %c0_30] : memref<4x1x32xf32, #tpu.memory_space<vmem>>, vector<1x1x32xf32>
    %54 = vector.shape_cast %53 : vector<1x1x32xf32> to vector<1x32xf32>
    %55 = vector.broadcast %54 : vector<1x32xf32> to vector<128x32xf32>
    %56 = arith.addf %51, %55 : vector<128x32xf32>
    %cst_31 = arith.constant 0.000000e+00 : f32
    %57 = vector.broadcast %cst_31 : f32 to vector<128x32xf32>
    %58 = arith.maximumf %56, %57 : vector<128x32xf32>
    %59 = arith.truncf %58 : vector<128x32xf32> to vector<128x32xbf16>
    %c4_i32 = arith.constant 4 : i32
    %60 = arith.addf %59, %3 : vector<128x32xbf16>
    %c0_32 = arith.constant 0 : index
    %c0_33 = arith.constant 0 : index
    %61 = vector.load %arg5[%c0_32, %c0_33] : memref<32x128xbf16, #tpu.memory_space<vmem>>, vector<32x128xbf16>
    %cst_34 = arith.constant dense<0.000000e+00> : vector<128x128xf32>
    %62 = tpu.matmul %60, %61, %cst_34 {dimension_numbers = #tpu.dot_dimension_numbers<[1], [0], [0], [1], [0, 0, 1, 1], [], []>} : vector<128x32xbf16>, vector<32x128xbf16>, vector<128x128xf32> -> vector<128x128xf32>
    %c0_35 = arith.constant 0 : index
    %c0_36 = arith.constant 0 : index
    %63 = vector.load %arg6[%c0_35, %c0_36] : memref<1x128xf32, #tpu.memory_space<vmem>>, vector<1x128xf32>
    %64 = vector.broadcast %63 : vector<1x128xf32> to vector<128x128xf32>
    %65 = arith.addf %62, %64 : vector<128x128xf32>
    %c0_37 = arith.constant 0 : index
    %c0_38 = arith.constant 0 : index
    %c0_39 = arith.constant 0 : index
    %66 = vector.load %arg7[%c0_37, %c0_38, %c0_39] : memref<1x128x128xf32, #tpu.memory_space<vmem>>, vector<1x128x128xf32>
    %67 = vector.shape_cast %66 : vector<1x128x128xf32> to vector<128x128xf32>
    %68 = vector.shape_cast %65 : vector<128x128xf32> to vector<1x128x128xf32>
    tpu.vector_store %arg7[%c0_37, %c0_38, %c0_39], %68 {strides = array<i32>} : memref<1x128x128xf32, #tpu.memory_space<vmem>>, vector<1x128x128xf32>,
    return
  }
  func.func @transform_0(%arg0: i32) -> (i32, i32, i32) {
    %c0_i32 = arith.constant 0 : i32
    %c0_i32_0 = arith.constant 0 : i32
    %c0_i32_1 = arith.constant 0 : i32
    return %arg0, %c0_i32, %c0_i32_0 : i32, i32, i32
  }
  func.func @transform_1(%arg0: i32) -> (i32, i32, i32) {
    %c0_i32 = arith.constant 0 : i32
    %c0_i32_0 = arith.constant 0 : i32
    %c0_i32_1 = arith.constant 0 : i32
    return %arg0, %c0_i32, %c0_i32_0 : i32, i32, i32
  }
  func.func @transform_2(%arg0: i32) -> (i32, i32, i32) {
    %c0_i32 = arith.constant 0 : i32
    %c0_i32_0 = arith.constant 0 : i32
    %c0_i32_1 = arith.constant 0 : i32
    %c0_i32_2 = arith.constant 0 : i32
    return %c0_i32, %c0_i32_0, %c0_i32_1 : i32, i32, i32
  }
  func.func @transform_3(%arg0: i32) -> (i32, i32, i32) {
    %c0_i32 = arith.constant 0 : i32
    %c0_i32_0 = arith.constant 0 : i32
    %c0_i32_1 = arith.constant 0 : i32
    %c0_i32_2 = arith.constant 0 : i32
    return %c0_i32, %c0_i32_0, %c0_i32_1 : i32, i32, i32
  }
  func.func @transform_4(%arg0: i32) -> (i32, i32) {
    %c0_i32 = arith.constant 0 : i32
    %c0_i32_0 = arith.constant 0 : i32
    %c0_i32_1 = arith.constant 0 : i32
    return %c0_i32, %c0_i32_0 : i32, i32
  }
  func.func @transform_5(%arg0: i32) -> (i32, i32) {
    %c0_i32 = arith.constant 0 : i32
    %c0_i32_0 = arith.constant 0 : i32
    %c0_i32_1 = arith.constant 0 : i32
    return %c0_i32, %c0_i32_0 : i32, i32
  }
  func.func @transform_6(%arg0: i32) -> (i32, i32, i32) {
    %c0_i32 = arith.constant 0 : i32
    %c0_i32_0 = arith.constant 0 : i32
    %c0_i32_1 = arith.constant 0 : i32
    return %arg0, %c0_i32, %c0_i32_0 : i32, i32, i32
  }
}

</mosaic_0001>

<bundles_post_ra>
// kernel: tpu_custom_call.1
= control target key start
LH: loop header
LB: loop body
LE: loop exit
PB: predicated region body
PF: predicated region fallthrough
CT: control target
= control target key end

     0   :  { %11 = vsyncpa [#allocation3], 0  ;;  %s2054_s0 = inlined_call_operand.vmem [shape: bf16[2,128,128], index: 0, kind: input, shape index: {}]   ;;  %s2055_s1 = inlined_call_operand.vmem [shape: bf16[2,128,32], index: 1, kind: input, shape index: {}]   ;;  %s2056_s2 = inlined_call_operand.hbm [shape: bf16[4,32,32], index: 2, kind: input, shape index: {}]   ;;  %s2057_s3 = inlined_call_operand.vmem [shape: f32[4,1,32], index: 3, kind: input, shape index: {}]   ;;  %s2058_s4 = inlined_call_operand.vmem [shape: bf16[32,128], index: 4, kind: input, shape index: {}]   ;;  %s2059_s5 = inlined_call_operand.vmem [shape: f32[1,128], index: 5, kind: input, shape index: {}]   ;;  %s2060_s6 = inlined_call_operand.hbm [shape: f32[2,128,128], index: 6, kind: output, shape index: {}]  }
   0x1   :  { %12 = vsyncpa [#allocation4], 0 }
   0x2   :  { %14 = vsyncpa [#allocation4 + $0x1], 0  ;;  %s1781_s21 = smov 0   ;;  %s1783_s22 = smov 0  }
   0x3   :  { %s1785_s23 = smov 0   ;;  %s1787_s24 = smov 0  }
   0x4 LB: > { %s1802_s25 = sadd.s32 4294967295, %s1739_s24   ;;  %s1386_s26 = sadd.s32 4294967294, %s1739_s24   ;;  %s1739_s24 = sphi %s1787_s24, %s2066_s24   ;;  %s1735_s23 = sphi %s1785_s23, %s2065_s23   ;;  %s1731_s22 = sphi %s1783_s22, %s2064_s22   ;;  %s1727_s21 = sphi %s1781_s21, %s2063_s21  }
   0x5   : > { %s1806_s27 = sadd.s32 1, %s1739_s24   ;;  %s163_s28 = sadd.s32 1, %s1735_s23 }
   0x6   : > { %s160_s29 = ssub.s32 %s1739_s24, %s1806_s27  ;;  %p173_p0 = scmp.ne.s32.totalorder %s1735_s23, %s1731_s22 }
   0x7   : > { %p161_p1 = scmp.eq.s32.totalorder %s160_s29, 0  ;;  %p174_p2 = scmp.eq.s32.totalorder %s1802_s25, 1 }
   0x8   : > { %p179_p3 = scmp.ne.s32.totalorder %s1731_s22, %s1727_s21  ;;  %p180_p4 = scmp.eq.s32.totalorder %s1386_s26, 1 }
   0x9   : > { %s1817_s30 = scalar_select %p161_p1, %s1735_s23, %s163_s28  }
   0xa   : > { %p1819_p5 = por %p174_p2, %p173_p0  ;;  %p1823_p6 = por %p180_p4, %p179_p3 }
   0xb   : > { %p1387_p7 = scmp.ge.s32.totalorder %s1739_s24, 1  ;;  %p187_p8 = scmp.lt.s32.totalorder %s1739_s24, 3 }
   0xc   : > { %p1598_p9 = scmp.eq.s32.totalorder %s1802_s25, 0  ;;  %s198_s11 = sshll.u32 %s2056_s2, 4  ;;  %s199_s11 = int_to_ptr.hbm [resolvable:$true] %s198_s11 }
   0xd   : > { %p188_p10 = pnand %p1387_p7, %p187_p8  ;;  %s1741_s12 = smov [#allocation2]  }
   0xe   : > { %s200_s13 = sshll.u32 %s1741_s12, 4  ;;  %s1742_s14 = smov 64   ;;  %s201_s13 = int_to_ptr.vmem [resolvable:$true] %s200_s13 }
   0xf   : > { %p1590_p11 = pneg %p188_p10  ;;  %s1743_s15 = smov 4  }
  0x10   : > { %241 = sbr.rel (%p188_p10) target bundleno = 1898 (0x76a), region = 44 }
  0x11   : > { %p1591_p12 = pnand %p1598_p9, %p1590_p11 }
  0x13   : > { %1593 = dma.hbm_to_vmem [thread:$0]  (!%p1591_p12), %s199_s11, 1024, %s201_s13, [#allocation3], %s1742_s14, %s1742_s14, %s1743_s15  }
  0x15   : > { %1718 = dma.done.wait (%p1598_p9), [#allocation3], 1024  }
  0x16   : > { %1720 = vsyncadd (%p1598_p9), [#allocation3], 4294966272  ;;  %p277_p13 = scmp.lt.s32.totalorder %s1802_s25, 1  ;;  %v1568_v0 = vld [vmem:[#allocation2 + $0x8] sm:$0xff]  ;;  %v1567_v1 = vld [vmem:[#allocation2] sm:$0xff]  ;;  %vm376_vm0 = vcmask 261120  }
  0x17   : > { %1579 = vmatpush.bf16.msra.mxu2 %v1568_v0  ;;  %1580 = vmatpush.bf16.msra.mxu3 %v1568_v0  ;;  %v1570_v41 = vld [vmem:[#allocation2 + $0x18] sm:$0xff]  ;;  %v1569_v42 = vld [vmem:[#allocation2 + $0x10] sm:$0xff]  ;;  %v1638_v45 = vld [vmem:[%s2057_s3] ss:$0 sm:$0xff]  ;;  %s274_s28 = sand.u32 1, %s1731_s22   ;;  %s1577_s11 = sshll.u32 %s1802_s25, 7 }
  0x18   : > { %s1841_s16 = scalar_select %p277_p13, %s1802_s25, 1  ;;  %1578 = vmatpush.bf16.msra.mxu1 %v1568_v0  ;;  %407 = vmatpush.bf16.msra.mxu0 %v1568_v0 }
  0x19   : > { %s1296_s14 = scalar_lea.hbm %s2060_s6, %s1577_s11 }
  0x1a   : > { %s1549_s17 = sshll.u32 %s1841_s16, 6  ;;  %s1299_s16 = sshll.u32 %s1296_s14, 4  ;;  %s1300_s16 = int_to_ptr.hbm [resolvable:$true] %s1299_s16 }
  0x1b   : > { %s1849_s20 = scalar_lea.vmem %s2055_s1, %s1549_s17  ;;  %1582 = vmatpush.bf16.msra.mxu2 %v1567_v1  ;;  %1583 = vmatpush.bf16.msra.mxu3 %v1567_v1  ;;  %s281_s29 = scalar_lea.vmem %s2054_s0, %s1549_s17 }
  0x1c   : > { %v1563_v2 = vld [vmem:[%s1849_s20 + $0x20] sm:$0xff]  ;;  %v1565_v3 = vld [vmem:[%s1849_s20 + $0x30] sm:$0xff]  ;;  %1581 = vmatpush.bf16.msra.mxu1 %v1567_v1  ;;  %408 = vmatpush.bf16.msra.mxu0 %v1567_v1  ;;  %v1564_v6 = vld [vmem:[%s1849_s20 + $0x28] sm:$0xff]  ;;  %s1285_s17 = scalar_lea.sflag [#allocation4], %s274_s28  ;;  %s1687_s18 = sshra.s32 %s1300_s16, 4  ;;  %s1688_s18 = int_to_ptr.hbm [resolvable:$true] %s1687_s18 }
  0x1d   : > { %v1561_v4 = vld [vmem:[%s1849_s20 + $0x10] sm:$0xff]  ;;  %v1559_v5 = vld [vmem:[%s1849_s20] sm:$0xff]  ;;  %v1566_v7 = vld [vmem:[%s1849_s20 + $0x38] sm:$0xff]  ;;  %s1689_s25 = scalar_lea.hbm %s1688_s18, 128  ;;  %p1694_p3 = scmp.lt.s32.totalorder %s1688_s18, %s2060_s6 }
  0x1e   : > { %1441 = vmatmul.msk.bf16.vlgmr.msra.gmra.mxu2 %vm376_vm0, %v1563_v2  ;;  %1443 = vmatmul.msk.bf16.vlgmr.msra.gmra.mxu3 %vm376_vm0, %v1565_v3  ;;  %v1562_v8 = vld [vmem:[%s1849_s20 + $0x18] sm:$0xff]  ;;  %v1560_v9 = vld [vmem:[%s1849_s20 + $0x8] sm:$0xff]  ;;  %v1872_v34 = vld [vmem:[%s281_s29] sm:$0xff]  ;;  %p1690_p0 = scmp.ne.s32.totalorder %s1688_s18, %s1689_s25 }
  0x1f   : > { %1439 = vmatmul.msk.bf16.vlgmr.msra.gmra.mxu1 %vm376_vm0, %v1561_v4  ;;  %1437 = vmatmul.msk.bf16.vlgmr.msra.gmra.mxu0 %vm376_vm0, %v1559_v5  ;;  %v1875_v35 = vld [vmem:[%s281_s29 + $0x8] sm:$0xff]  ;;  %v1878_v36 = vld [vmem:[%s281_s29 + $0x10] sm:$0xff]  ;;  %v1881_v37 = vld [vmem:[%s281_s29 + $0x18] sm:$0xff] }
  0x20   : > { %v1884_v38 = vld [vmem:[%s281_s29 + $0x20] sm:$0xff]  ;;  %v1887_v39 = vld [vmem:[%s281_s29 + $0x28] sm:$0xff]  ;;  %v1890_v40 = vld [vmem:[%s281_s29 + $0x30] sm:$0xff]  ;;  %630 = vmatpush.bf16.msrb.mxu2 %v1570_v41  ;;  %p1691_p1 = pnand %p1690_p0, %p1819_p5 }
  0x21   : > { %v1893_v43 = vld [vmem:[%s281_s29 + $0x38] sm:$0xff]  ;;  %s1392_s29 = sshll.u32 %s274_s28, 7 }
  0x22   : > { %p1692_p2 = pneg %p1691_p1 }
  0x24   : > { %631 = vmatpush.bf16.msrb.mxu2 %v1569_v42 }
  0x2e   : > { %1442 = vmatmul.msk.bf16.gmra.mxu2 %vm376_vm0, %v1564_v6  ;;  %1444 = vmatmul.msk.bf16.gmra.mxu3 %vm376_vm0, %v1566_v7 }
  0x2f   : > { %1440 = vmatmul.msk.bf16.gmra.mxu1 %vm376_vm0, %v1562_v8  ;;  %1438 = vmatmul.msk.bf16.gmra.mxu0 %vm376_vm0, %v1560_v9 }
  0x9c   : > { %v420_v12 = vpop.f32.mrf.mxu1  ;;  %v410_v15 = vpop.f32.mrf.mxu0 }
  0xa1   : > { %v430_v10 = vpop.f32.mrf.mxu2  ;;  %v440_v11 = vpop.f32.mrf.mxu3 }
  0xa4   : > { %v422_v17 = vpop.f32.mrf.mxu1  ;;  %v412_v21 = vpop.f32.mrf.mxu0 }
  0xa5   : > { %v452_v30 = vpack.c.bf16 %v422_v17, %v420_v12  ;;  %v450_v33 = vpack.c.bf16 %v412_v21, %v410_v15 }
  0xa9   : > { %v442_v13 = vpop.f32.mrf.mxu3  ;;  %v432_v14 = vpop.f32.mrf.mxu2 }
  0xaa   : > { %v456_v23 = vpack.c.bf16 %v442_v13, %v440_v11  ;;  %v454_v27 = vpack.c.bf16 %v432_v14, %v430_v10 }
  0xac   : > { %v425_v22 = vpop.f32.mrf.mxu1  ;;  %v415_v26 = vpop.f32.mrf.mxu0 }
  0xb1   : > { %v445_v16 = vpop.f32.mrf.mxu3  ;;  %v435_v18 = vpop.f32.mrf.mxu2 }
  0xb4   : > { %v427_v28 = vpop.f32.mrf.mxu1  ;;  %v417_v31 = vpop.f32.mrf.mxu0 }
  0xb5   : > { %v453_v29 = vpack.c.bf16 %v427_v28, %v425_v22  ;;  %v451_v32 = vpack.c.bf16 %v417_v31, %v415_v26 }
  0xb9   : > { %v447_v19 = vpop.f32.mrf.mxu3  ;;  %v437_v24 = vpop.f32.mrf.mxu2 }
  0xba   : > { %v457_v20 = vpack.c.bf16 %v447_v19, %v445_v16  ;;  %v455_v25 = vpack.c.bf16 %v437_v24, %v435_v18 }
  0xbc   : > { %510 = vmatpush.bf16.msrb.mxu1 %v457_v20 }
  0xc0   : > { %511 = vmatpush.bf16.msrb.mxu1 %v456_v23 }
  0xc4   : > { %512 = vmatpush.bf16.msrb.mxu1 %v455_v25 }
  0xc8   : > { %513 = vmatpush.bf16.msrb.mxu1 %v454_v27 }
  0xcc   : > { %514 = vmatpush.bf16.msrb.mxu1 %v453_v29 }
  0xd0   : > { %515 = vmatpush.bf16.msrb.mxu1 %v452_v30 }
  0xd4   : > { %516 = vmatpush.bf16.msrb.mxu1 %v451_v32 }
  0xd8   : > { %517 = vmatpush.bf16.msrb.mxu1 %v450_v33 }
  0xdb   : > { %518 = vmatmul.bf16.vlgmr.msrb.gmra.mxu1 %v1872_v34 }
  0xeb   : > { %523 = vmatmul.bf16.gmra.mxu1 %v1875_v35 }
  0xfb   : > { %528 = vmatmul.bf16.gmra.mxu1 %v1878_v36 }
 0x10b   : > { %533 = vmatmul.bf16.gmra.mxu1 %v1881_v37 }
 0x11b   : > { %538 = vmatmul.bf16.gmra.mxu1 %v1884_v38 }
 0x12b   : > { %543 = vmatmul.bf16.gmra.mxu1 %v1887_v39 }
 0x13b   : > { %548 = vmatmul.bf16.gmra.mxu1 %v1890_v40 }
 0x14b   : > { %553 = vmatmul.bf16.gmra.mxu1 %v1893_v43 }
 0x158   : > { %v519_v44 = vpop.f32.mrf.mxu1 }
 0x159   : > { %v520_v46 = vadd.f32 %v1638_v45, %v519_v44 }
 0x15b   : > { %v559_v49 = vmax.f32 %v520_v46, 0.0 }
 0x160   : > { %v521_v47 = vpop.f32.mrf.mxu1 }
 0x161   : > { %v522_v48 = vadd.f32 %v1638_v45, %v521_v47 }
 0x163   : > { %v560_v50 = vmax.f32 %v522_v48, 0.0 }
 0x165   : > { %v575_v51 = vpack.c.bf16 %v560_v50, %v559_v49 }
 0x167   : > { %1485 = vmatmul.msk.bf16.vlgmr.msrb.gmra.mxu2 %vm376_vm0, %v575_v51 }
 0x168   : > { %v524_v52 = vpop.f32.mrf.mxu1 }
 0x169   : > { %v525_v53 = vadd.f32 %v1638_v45, %v524_v52 }
 0x16b   : > { %v561_v56 = vmax.f32 %v525_v53, 0.0 }
 0x170   : > { %v526_v54 = vpop.f32.mrf.mxu1 }
 0x171   : > { %v527_v55 = vadd.f32 %v1638_v45, %v526_v54 }
 0x173   : > { %v562_v57 = vmax.f32 %v527_v55, 0.0 }
 0x175   : > { %v576_v58 = vpack.c.bf16 %v562_v57, %v561_v56 }
 0x177   : > { %1486 = vmatmul.msk.bf16.gmra.mxu2 %vm376_vm0, %v576_v58 }
 0x178   : > { %v529_v59 = vpop.f32.mrf.mxu1 }
 0x179   : > { %v530_v60 = vadd.f32 %v1638_v45, %v529_v59 }
 0x17b   : > { %v563_v63 = vmax.f32 %v530_v60, 0.0 }
 0x180   : > { %v531_v61 = vpop.f32.mrf.mxu1 }
 0x181   : > { %v532_v62 = vadd.f32 %v1638_v45, %v531_v61 }
 0x183   : > { %v564_v0 = vmax.f32 %v532_v62, 0.0 }
 0x185   : > { %v577_v1 = vpack.c.bf16 %v564_v0, %v563_v63 }
 0x187   : > { %1487 = vmatmul.msk.bf16.gmra.mxu2 %vm376_vm0, %v577_v1 }
 0x188   : > { %v534_v2 = vpop.f32.mrf.mxu1 }
 0x189   : > { %v535_v3 = vadd.f32 %v1638_v45, %v534_v2 }
 0x18b   : > { %v565_v6 = vmax.f32 %v535_v3, 0.0 }
 0x190   : > { %v536_v4 = vpop.f32.mrf.mxu1 }
 0x191   : > { %v537_v5 = vadd.f32 %v1638_v45, %v536_v4 }
 0x193   : > { %v566_v7 = vmax.f32 %v537_v5, 0.0  ;;  %v1572_v5 = vld [vmem:[#allocation2 + $0x28] sm:$0xff] }
 0x194   : > { %806 = vmatpush.bf16.msrb.mxu0 %v1572_v5 }
 0x195   : > { %v578_v8 = vpack.c.bf16 %v566_v7, %v565_v6  ;;  %v1571_v6 = vld [vmem:[#allocation2 + $0x20] sm:$0xff] }
 0x197   : > { %1488 = vmatmul.msk.bf16.gmra.mxu2 %vm376_vm0, %v578_v8  ;;  %v1639_v8 = vld [vmem:[%s2057_s3 + $0x1] ss:$0 sm:$0xff] }
 0x198   : > { %v539_v9 = vpop.f32.mrf.mxu1  ;;  %807 = vmatpush.bf16.msrb.mxu0 %v1571_v6 }
 0x199   : > { %v540_v10 = vadd.f32 %v1638_v45, %v539_v9 }
 0x19b   : > { %v567_v13 = vmax.f32 %v540_v10, 0.0 }
 0x1a0   : > { %v541_v11 = vpop.f32.mrf.mxu1 }
 0x1a1   : > { %v542_v12 = vadd.f32 %v1638_v45, %v541_v11 }
 0x1a3   : > { %v568_v14 = vmax.f32 %v542_v12, 0.0 }
 0x1a5   : > { %v579_v15 = vpack.c.bf16 %v568_v14, %v567_v13 }
 0x1a7   : > { %1489 = vmatmul.msk.bf16.gmra.mxu2 %vm376_vm0, %v579_v15 }
 0x1a8   : > { %v544_v16 = vpop.f32.mrf.mxu1 }
 0x1a9   : > { %v545_v17 = vadd.f32 %v1638_v45, %v544_v16 }
 0x1ab   : > { %v569_v20 = vmax.f32 %v545_v17, 0.0 }
 0x1b0   : > { %v546_v18 = vpop.f32.mrf.mxu1 }
 0x1b1   : > { %v547_v19 = vadd.f32 %v1638_v45, %v546_v18 }
 0x1b3   : > { %v570_v21 = vmax.f32 %v547_v19, 0.0 }
 0x1b5   : > { %v580_v22 = vpack.c.bf16 %v570_v21, %v569_v20 }
 0x1b7   : > { %1490 = vmatmul.msk.bf16.gmra.mxu2 %vm376_vm0, %v580_v22 }
 0x1b8   : > { %v549_v23 = vpop.f32.mrf.mxu1 }
 0x1b9   : > { %v550_v24 = vadd.f32 %v1638_v45, %v549_v23 }
 0x1bb   : > { %v571_v27 = vmax.f32 %v550_v24, 0.0 }
 0x1c0   : > { %v551_v25 = vpop.f32.mrf.mxu1 }
 0x1c1   : > { %v552_v26 = vadd.f32 %v1638_v45, %v551_v25 }
 0x1c3   : > { %v572_v28 = vmax.f32 %v552_v26, 0.0 }
 0x1c5   : > { %v581_v29 = vpack.c.bf16 %v572_v28, %v571_v27 }
 0x1c7   : > { %1491 = vmatmul.msk.bf16.gmra.mxu2 %vm376_vm0, %v581_v29 }
 0x1c8   : > { %v554_v30 = vpop.f32.mrf.mxu1 }
 0x1c9   : > { %v555_v31 = vadd.f32 %v1638_v45, %v554_v30 }
 0x1cb   : > { %v573_v41 = vmax.f32 %v555_v31, 0.0 }
 0x1d0   : > { %v556_v32 = vpop.f32.mrf.mxu1 }
 0x1d1   : > { %v557_v33 = vadd.f32 %v1638_v45, %v556_v32 }
 0x1d3   : > { %v574_v42 = vmax.f32 %v557_v33, 0.0 }
 0x1d5   : > { %v582_v44 = vpack.c.bf16 %v574_v42, %v573_v41 }
 0x1d7   : > { %1492 = vmatmul.msk.bf16.gmra.mxu2 %vm376_vm0, %v582_v44 }
 0x1ea   : > { %v633_v46 = vpop.f32.mrf.mxu2 }
 0x1f2   : > { %v635_v47 = vpop.f32.mrf.mxu2 }
 0x1f3   : > { %v673_v4 = vpack.c.bf16 %v635_v47, %v633_v46 }
 0x1fa   : > { %v638_v48 = vpop.f32.mrf.mxu2 }
 0x202   : > { %v640_v49 = vpop.f32.mrf.mxu2 }
 0x203   : > { %v674_v3 = vpack.c.bf16 %v640_v49, %v638_v48 }
 0x20a   : > { %v643_v50 = vpop.f32.mrf.mxu2 }
 0x212   : > { %v645_v51 = vpop.f32.mrf.mxu2 }
 0x213   : > { %v675_v2 = vpack.c.bf16 %v645_v51, %v643_v50 }
 0x21a   : > { %v648_v52 = vpop.f32.mrf.mxu2 }
 0x222   : > { %v650_v53 = vpop.f32.mrf.mxu2 }
 0x223   : > { %v676_v1 = vpack.c.bf16 %v650_v53, %v648_v52 }
 0x22a   : > { %v653_v54 = vpop.f32.mrf.mxu2 }
 0x232   : > { %v655_v55 = vpop.f32.mrf.mxu2 }
 0x233   : > { %v677_v0 = vpack.c.bf16 %v655_v55, %v653_v54 }
 0x23a   : > { %v658_v56 = vpop.f32.mrf.mxu2 }
 0x242   : > { %v660_v57 = vpop.f32.mrf.mxu2 }
 0x243   : > { %v678_v63 = vpack.c.bf16 %v660_v57, %v658_v56 }
 0x24a   : > { %v663_v58 = vpop.f32.mrf.mxu2 }
 0x252   : > { %v665_v59 = vpop.f32.mrf.mxu2 }
 0x253   : > { %v679_v62 = vpack.c.bf16 %v665_v59, %v663_v58 }
 0x25a   : > { %v668_v45 = vpop.f32.mrf.mxu2 }
 0x262   : > { %v670_v60 = vpop.f32.mrf.mxu2 }
 0x263   : > { %v680_v61 = vpack.c.bf16 %v670_v60, %v668_v45 }
 0x265   : > { %686 = vmatpush.bf16.msrb.mxu3 %v680_v61 }
 0x269   : > { %687 = vmatpush.bf16.msrb.mxu3 %v679_v62 }
 0x26d   : > { %688 = vmatpush.bf16.msrb.mxu3 %v678_v63 }
 0x271   : > { %689 = vmatpush.bf16.msrb.mxu3 %v677_v0 }
 0x275   : > { %690 = vmatpush.bf16.msrb.mxu3 %v676_v1 }
 0x279   : > { %691 = vmatpush.bf16.msrb.mxu3 %v675_v2 }
 0x27d   : > { %692 = vmatpush.bf16.msrb.mxu3 %v674_v3 }
 0x281   : > { %693 = vmatpush.bf16.msrb.mxu3 %v673_v4 }
 0x284   : > { %694 = vmatmul.bf16.vlgmr.msrb.gmra.mxu3 %v1872_v34 }
 0x294   : > { %699 = vmatmul.bf16.gmra.mxu3 %v1875_v35 }
 0x2a4   : > { %704 = vmatmul.bf16.gmra.mxu3 %v1878_v36 }
 0x2b4   : > { %709 = vmatmul.bf16.gmra.mxu3 %v1881_v37 }
 0x2c4   : > { %714 = vmatmul.bf16.gmra.mxu3 %v1884_v38 }
 0x2d4   : > { %719 = vmatmul.bf16.gmra.mxu3 %v1887_v39 }
 0x2e4   : > { %724 = vmatmul.bf16.gmra.mxu3 %v1890_v40 }
 0x2f4   : > { %729 = vmatmul.bf16.gmra.mxu3 %v1893_v43 }
 0x307   : > { %v695_v7 = vpop.f32.mrf.mxu3 }
 0x308   : > { %v696_v9 = vadd.f32 %v1639_v8, %v695_v7 }
 0x30a   : > { %v735_v12 = vmax.f32 %v696_v9, 0.0 }
 0x30f   : > { %v697_v10 = vpop.f32.mrf.mxu3 }
 0x310   : > { %v698_v11 = vadd.f32 %v1639_v8, %v697_v10 }
 0x312   : > { %v736_v13 = vmax.f32 %v698_v11, 0.0 }
 0x314   : > { %v751_v14 = vpack.c.bf16 %v736_v13, %v735_v12 }
 0x316   : > { %1502 = vmatmul.msk.bf16.vlgmr.msrb.gmra.mxu0 %vm376_vm0, %v751_v14 }
 0x317   : > { %v700_v15 = vpop.f32.mrf.mxu3 }
 0x318   : > { %v701_v16 = vadd.f32 %v1639_v8, %v700_v15 }
 0x31a   : > { %v737_v19 = vmax.f32 %v701_v16, 0.0 }
 0x31f   : > { %v702_v17 = vpop.f32.mrf.mxu3 }
 0x320   : > { %v703_v18 = vadd.f32 %v1639_v8, %v702_v17 }
 0x322   : > { %v738_v20 = vmax.f32 %v703_v18, 0.0 }
 0x324   : > { %v752_v21 = vpack.c.bf16 %v738_v20, %v737_v19 }
 0x326   : > { %1503 = vmatmul.msk.bf16.gmra.mxu0 %vm376_vm0, %v752_v21 }
 0x327   : > { %v705_v22 = vpop.f32.mrf.mxu3 }
 0x328   : > { %v706_v23 = vadd.f32 %v1639_v8, %v705_v22 }
 0x32a   : > { %v739_v26 = vmax.f32 %v706_v23, 0.0 }
 0x32f   : > { %v707_v24 = vpop.f32.mrf.mxu3 }
 0x330   : > { %v708_v25 = vadd.f32 %v1639_v8, %v707_v24 }
 0x332   : > { %v740_v27 = vmax.f32 %v708_v25, 0.0 }
 0x334   : > { %v753_v28 = vpack.c.bf16 %v740_v27, %v739_v26 }
 0x336   : > { %1504 = vmatmul.msk.bf16.gmra.mxu0 %vm376_vm0, %v753_v28 }
 0x337   : > { %v710_v29 = vpop.f32.mrf.mxu3 }
 0x338   : > { %v711_v30 = vadd.f32 %v1639_v8, %v710_v29 }
 0x33a   : > { %v741_v33 = vmax.f32 %v711_v30, 0.0 }
 0x33f   : > { %v712_v31 = vpop.f32.mrf.mxu3 }
 0x340   : > { %v713_v32 = vadd.f32 %v1639_v8, %v712_v31 }
 0x342   : > { %v742_v41 = vmax.f32 %v713_v32, 0.0  ;;  %v1574_v32 = vld [vmem:[#allocation2 + $0x38] sm:$0xff] }
 0x343   : > { %982 = vmatpush.bf16.msra.mxu1 %v1574_v32 }
 0x344   : > { %v754_v42 = vpack.c.bf16 %v742_v41, %v741_v33  ;;  %v1573_v33 = vld [vmem:[#allocation2 + $0x30] sm:$0xff] }
 0x346   : > { %1505 = vmatmul.msk.bf16.gmra.mxu0 %vm376_vm0, %v754_v42  ;;  %v1640_v42 = vld [vmem:[%s2057_s3 + $0x2] ss:$0 sm:$0xff] }
 0x347   : > { %v715_v44 = vpop.f32.mrf.mxu3  ;;  %983 = vmatpush.bf16.msra.mxu1 %v1573_v33 }
 0x348   : > { %v716_v46 = vadd.f32 %v1639_v8, %v715_v44 }
 0x34a   : > { %v743_v49 = vmax.f32 %v716_v46, 0.0 }
 0x34f   : > { %v717_v47 = vpop.f32.mrf.mxu3 }
 0x350   : > { %v718_v48 = vadd.f32 %v1639_v8, %v717_v47 }
 0x352   : > { %v744_v50 = vmax.f32 %v718_v48, 0.0 }
 0x354   : > { %v755_v51 = vpack.c.bf16 %v744_v50, %v743_v49 }
 0x356   : > { %1506 = vmatmul.msk.bf16.gmra.mxu0 %vm376_vm0, %v755_v51 }
 0x357   : > { %v720_v52 = vpop.f32.mrf.mxu3 }
 0x358   : > { %v721_v53 = vadd.f32 %v1639_v8, %v720_v52 }
 0x35a   : > { %v745_v56 = vmax.f32 %v721_v53, 0.0 }
 0x35f   : > { %v722_v54 = vpop.f32.mrf.mxu3 }
 0x360   : > { %v723_v55 = vadd.f32 %v1639_v8, %v722_v54 }
 0x362   : > { %v746_v57 = vmax.f32 %v723_v55, 0.0 }
 0x364   : > { %v756_v58 = vpack.c.bf16 %v746_v57, %v745_v56 }
 0x366   : > { %1507 = vmatmul.msk.bf16.gmra.mxu0 %vm376_vm0, %v756_v58 }
 0x367   : > { %v725_v59 = vpop.f32.mrf.mxu3 }
 0x368   : > { %v726_v45 = vadd.f32 %v1639_v8, %v725_v59 }
 0x36a   : > { %v747_v62 = vmax.f32 %v726_v45, 0.0 }
 0x36f   : > { %v727_v60 = vpop.f32.mrf.mxu3 }
 0x370   : > { %v728_v61 = vadd.f32 %v1639_v8, %v727_v60 }
 0x372   : > { %v748_v63 = vmax.f32 %v728_v61, 0.0 }
 0x374   : > { %v757_v0 = vpack.c.bf16 %v748_v63, %v747_v62 }
 0x376   : > { %1508 = vmatmul.msk.bf16.gmra.mxu0 %vm376_vm0, %v757_v0 }
 0x377   : > { %v730_v1 = vpop.f32.mrf.mxu3 }
 0x378   : > { %v731_v2 = vadd.f32 %v1639_v8, %v730_v1 }
 0x37a   : > { %v749_v5 = vmax.f32 %v731_v2, 0.0 }
 0x37f   : > { %v732_v3 = vpop.f32.mrf.mxu3 }
 0x380   : > { %v733_v4 = vadd.f32 %v1639_v8, %v732_v3 }
 0x382   : > { %v750_v6 = vmax.f32 %v733_v4, 0.0 }
 0x384   : > { %v758_v7 = vpack.c.bf16 %v750_v6, %v749_v5 }
 0x386   : > { %1509 = vmatmul.msk.bf16.gmra.mxu0 %vm376_vm0, %v758_v7 }
 0x393   : > { %v809_v9 = vpop.f32.mrf.mxu0 }
 0x39b   : > { %v811_v10 = vpop.f32.mrf.mxu0 }
 0x39c   : > { %v849_v31 = vpack.c.bf16 %v811_v10, %v809_v9 }
 0x3a3   : > { %v814_v11 = vpop.f32.mrf.mxu0 }
 0x3ab   : > { %v816_v12 = vpop.f32.mrf.mxu0 }
 0x3ac   : > { %v850_v30 = vpack.c.bf16 %v816_v12, %v814_v11 }
 0x3b3   : > { %v819_v13 = vpop.f32.mrf.mxu0 }
 0x3bb   : > { %v821_v14 = vpop.f32.mrf.mxu0 }
 0x3bc   : > { %v851_v29 = vpack.c.bf16 %v821_v14, %v819_v13 }
 0x3c3   : > { %v824_v15 = vpop.f32.mrf.mxu0 }
 0x3cb   : > { %v826_v16 = vpop.f32.mrf.mxu0 }
 0x3cc   : > { %v852_v28 = vpack.c.bf16 %v826_v16, %v824_v15 }
 0x3d3   : > { %v829_v17 = vpop.f32.mrf.mxu0 }
 0x3db   : > { %v831_v18 = vpop.f32.mrf.mxu0 }
 0x3dc   : > { %v853_v27 = vpack.c.bf16 %v831_v18, %v829_v17 }
 0x3e3   : > { %v834_v19 = vpop.f32.mrf.mxu0 }
 0x3eb   : > { %v836_v20 = vpop.f32.mrf.mxu0 }
 0x3ec   : > { %v854_v26 = vpack.c.bf16 %v836_v20, %v834_v19 }
 0x3f3   : > { %v839_v21 = vpop.f32.mrf.mxu0 }
 0x3fb   : > { %v841_v22 = vpop.f32.mrf.mxu0 }
 0x3fc   : > { %v855_v25 = vpack.c.bf16 %v841_v22, %v839_v21 }
 0x403   : > { %v844_v8 = vpop.f32.mrf.mxu0 }
 0x40b   : > { %v846_v23 = vpop.f32.mrf.mxu0 }
 0x40c   : > { %v856_v24 = vpack.c.bf16 %v846_v23, %v844_v8 }
 0x40e   : > { %862 = vmatpush.bf16.msra.mxu2 %v856_v24 }
 0x412   : > { %863 = vmatpush.bf16.msra.mxu2 %v855_v25 }
 0x416   : > { %864 = vmatpush.bf16.msra.mxu2 %v854_v26 }
 0x41a   : > { %865 = vmatpush.bf16.msra.mxu2 %v853_v27 }
 0x41e   : > { %866 = vmatpush.bf16.msra.mxu2 %v852_v28 }
 0x422   : > { %867 = vmatpush.bf16.msra.mxu2 %v851_v29 }
 0x426   : > { %868 = vmatpush.bf16.msra.mxu2 %v850_v30 }
 0x42a   : > { %869 = vmatpush.bf16.msra.mxu2 %v849_v31 }
 0x42d   : > { %870 = vmatmul.bf16.vlgmr.msra.gmra.mxu2 %v1872_v34 }
 0x43d   : > { %875 = vmatmul.bf16.gmra.mxu2 %v1875_v35 }
 0x44d   : > { %880 = vmatmul.bf16.gmra.mxu2 %v1878_v36 }
 0x45d   : > { %885 = vmatmul.bf16.gmra.mxu2 %v1881_v37 }
 0x46d   : > { %890 = vmatmul.bf16.gmra.mxu2 %v1884_v38 }
 0x47d   : > { %895 = vmatmul.bf16.gmra.mxu2 %v1887_v39 }
 0x48d   : > { %900 = vmatmul.bf16.gmra.mxu2 %v1890_v40 }
 0x49d   : > { %905 = vmatmul.bf16.gmra.mxu2 %v1893_v43 }
 0x4b0   : > { %v871_v41 = vpop.f32.mrf.mxu2 }
 0x4b1   : > { %v872_v44 = vadd.f32 %v1640_v42, %v871_v41 }
 0x4b3   : > { %v911_v48 = vmax.f32 %v872_v44, 0.0 }
 0x4b8   : > { %v873_v46 = vpop.f32.mrf.mxu2 }
 0x4b9   : > { %v874_v47 = vadd.f32 %v1640_v42, %v873_v46 }
 0x4bb   : > { %v912_v49 = vmax.f32 %v874_v47, 0.0 }
 0x4bd   : > { %v927_v50 = vpack.c.bf16 %v912_v49, %v911_v48 }
 0x4bf   : > { %1519 = vmatmul.msk.bf16.vlgmr.msra.gmra.mxu1 %vm376_vm0, %v927_v50 }
 0x4c0   : > { %v876_v51 = vpop.f32.mrf.mxu2 }
 0x4c1   : > { %v877_v52 = vadd.f32 %v1640_v42, %v876_v51 }
 0x4c3   : > { %v913_v55 = vmax.f32 %v877_v52, 0.0 }
 0x4c8   : > { %v878_v53 = vpop.f32.mrf.mxu2 }
 0x4c9   : > { %v879_v54 = vadd.f32 %v1640_v42, %v878_v53 }
 0x4cb   : > { %v914_v56 = vmax.f32 %v879_v54, 0.0 }
 0x4cd   : > { %v928_v57 = vpack.c.bf16 %v914_v56, %v913_v55 }
 0x4cf   : > { %1520 = vmatmul.msk.bf16.gmra.mxu1 %vm376_vm0, %v928_v57 }
 0x4d0   : > { %v881_v58 = vpop.f32.mrf.mxu2 }
 0x4d1   : > { %v882_v59 = vadd.f32 %v1640_v42, %v881_v58 }
 0x4d3   : > { %v915_v61 = vmax.f32 %v882_v59, 0.0 }
 0x4d8   : > { %v883_v45 = vpop.f32.mrf.mxu2 }
 0x4d9   : > { %v884_v60 = vadd.f32 %v1640_v42, %v883_v45 }
 0x4db   : > { %v916_v62 = vmax.f32 %v884_v60, 0.0 }
 0x4dd   : > { %v929_v63 = vpack.c.bf16 %v916_v62, %v915_v61 }
 0x4df   : > { %1521 = vmatmul.msk.bf16.gmra.mxu1 %vm376_vm0, %v929_v63 }
 0x4e0   : > { %v886_v0 = vpop.f32.mrf.mxu2 }
 0x4e1   : > { %v887_v1 = vadd.f32 %v1640_v42, %v886_v0 }
 0x4e3   : > { %v917_v4 = vmax.f32 %v887_v1, 0.0 }
 0x4e8   : > { %v888_v2 = vpop.f32.mrf.mxu2 }
 0x4e9   : > { %v889_v3 = vadd.f32 %v1640_v42, %v888_v2 }
 0x4eb   : > { %v918_v5 = vmax.f32 %v889_v3, 0.0  ;;  %v1576_v3 = vld [vmem:[%s2058_s4 + $0x8] sm:$0xff] }
 0x4ec   : > { %1225 = vmatpush.bf16.msra.mxu0 %v1576_v3 }
 0x4ed   : > { %v930_v6 = vpack.c.bf16 %v918_v5, %v917_v4  ;;  %v1575_v4 = vld [vmem:[%s2058_s4] sm:$0xff] }
 0x4ef   : > { %1522 = vmatmul.msk.bf16.gmra.mxu1 %vm376_vm0, %v930_v6 }
 0x4f0   : > { %v891_v7 = vpop.f32.mrf.mxu2  ;;  %1226 = vmatpush.bf16.msra.mxu0 %v1575_v4 }
 0x4f1   : > { %v892_v9 = vadd.f32 %v1640_v42, %v891_v7  ;;  %v304_v7 = vld [vmem:[%s1849_s20] sm:$0xff]  }
 0x4f3   : > { %v919_v12 = vmax.f32 %v892_v9, 0.0 }
 0x4f8   : > { %v893_v10 = vpop.f32.mrf.mxu2 }
 0x4f9   : > { %v894_v11 = vadd.f32 %v1640_v42, %v893_v10 }
 0x4fb   : > { %v920_v13 = vmax.f32 %v894_v11, 0.0 }
 0x4fd   : > { %v931_v14 = vpack.c.bf16 %v920_v13, %v919_v12 }
 0x4ff   : > { %1523 = vmatmul.msk.bf16.gmra.mxu1 %vm376_vm0, %v931_v14 }
 0x500   : > { %v896_v15 = vpop.f32.mrf.mxu2 }
 0x501   : > { %v897_v16 = vadd.f32 %v1640_v42, %v896_v15 }
 0x503   : > { %v921_v19 = vmax.f32 %v897_v16, 0.0 }
 0x508   : > { %v898_v17 = vpop.f32.mrf.mxu2 }
 0x509   : > { %v899_v18 = vadd.f32 %v1640_v42, %v898_v17 }
 0x50b   : > { %v922_v20 = vmax.f32 %v899_v18, 0.0 }
 0x50d   : > { %v932_v21 = vpack.c.bf16 %v922_v20, %v921_v19 }
 0x50f   : > { %1524 = vmatmul.msk.bf16.gmra.mxu1 %vm376_vm0, %v932_v21  ;;  %v306_v21 = vld [vmem:[%s1849_s20 + $0x8] sm:$0xff]  }
 0x510   : > { %v901_v22 = vpop.f32.mrf.mxu2 }
 0x511   : > { %v902_v8 = vadd.f32 %v1640_v42, %v901_v22 }
 0x513   : > { %v923_v25 = vmax.f32 %v902_v8, 0.0 }
 0x518   : > { %v903_v23 = vpop.f32.mrf.mxu2 }
 0x519   : > { %v904_v24 = vadd.f32 %v1640_v42, %v903_v23  ;;  %v1137_v23 = vunpack.c.l.bf16 %v306_v21 }
 0x51b   : > { %v924_v26 = vmax.f32 %v904_v24, 0.0 }
 0x51d   : > { %v933_v27 = vpack.c.bf16 %v924_v26, %v923_v25  ;;  %v1138_v25 = vunpack.c.h.bf16 %v306_v21 }
 0x51f   : > { %1525 = vmatmul.msk.bf16.gmra.mxu1 %vm376_vm0, %v933_v27 }
 0x520   : > { %v906_v28 = vpop.f32.mrf.mxu2 }
 0x521   : > { %v907_v29 = vadd.f32 %v1640_v42, %v906_v28 }
 0x523   : > { %v925_v32 = vmax.f32 %v907_v29, 0.0 }
 0x528   : > { %v908_v30 = vpop.f32.mrf.mxu2 }
 0x529   : > { %v909_v31 = vadd.f32 %v1640_v42, %v908_v30 }
 0x52b   : > { %v926_v33 = vmax.f32 %v909_v31, 0.0 }
 0x52d   : > { %v934_v41 = vpack.c.bf16 %v926_v33, %v925_v32 }
 0x52f   : > { %1526 = vmatmul.msk.bf16.gmra.mxu1 %vm376_vm0, %v934_v41 }
 0x53c   : > { %v985_v44 = vpop.f32.mrf.mxu1 }
 0x544   : > { %v987_v46 = vpop.f32.mrf.mxu1 }
 0x545   : > { %v1025_v47 = vpack.c.bf16 %v987_v46, %v985_v44  ;;  %v308_v46 = vld [vmem:[%s1849_s20 + $0x10] sm:$0xff]  }
 0x54c   : > { %v990_v48 = vpop.f32.mrf.mxu1 }
 0x554   : > { %v992_v49 = vpop.f32.mrf.mxu1 }
 0x555   : > { %v1026_v50 = vpack.c.bf16 %v992_v49, %v990_v48  ;;  %v1139_v49 = vunpack.c.l.bf16 %v308_v46 }
 0x55c   : > { %v995_v51 = vpop.f32.mrf.mxu1 }
 0x564   : > { %v997_v52 = vpop.f32.mrf.mxu1 }
 0x565   : > { %v1027_v53 = vpack.c.bf16 %v997_v52, %v995_v51  ;;  %v1140_v51 = vunpack.c.h.bf16 %v308_v46 }
 0x56c   : > { %v1000_v54 = vpop.f32.mrf.mxu1 }
 0x574   : > { %v1002_v55 = vpop.f32.mrf.mxu1 }
 0x575   : > { %v1028_v56 = vpack.c.bf16 %v1002_v55, %v1000_v54 }
 0x57c   : > { %v1005_v57 = vpop.f32.mrf.mxu1 }
 0x584   : > { %v1007_v58 = vpop.f32.mrf.mxu1 }
 0x585   : > { %v1029_v2 = vpack.c.bf16 %v1007_v58, %v1005_v57 }
 0x58c   : > { %v1010_v42 = vpop.f32.mrf.mxu1 }
 0x594   : > { %v1012_v59 = vpop.f32.mrf.mxu1 }
 0x595   : > { %v1030_v1 = vpack.c.bf16 %v1012_v59, %v1010_v42 }
 0x59c   : > { %v1015_v45 = vpop.f32.mrf.mxu1 }
 0x5a4   : > { %v1017_v60 = vpop.f32.mrf.mxu1 }
 0x5a5   : > { %v1031_v0 = vpack.c.bf16 %v1017_v60, %v1015_v45  ;;  %v310_v60 = vld [vmem:[%s1849_s20 + $0x18] sm:$0xff]  }
 0x5ac   : > { %v1020_v61 = vpop.f32.mrf.mxu1 }
 0x5b4   : > { %v1022_v62 = vpop.f32.mrf.mxu1 }
 0x5b5   : > { %v1032_v63 = vpack.c.bf16 %v1022_v62, %v1020_v61 }
 0x5b7   : > { %1038 = vmatpush.bf16.msra.mxu3 %v1032_v63  ;;  %v1141_v63 = vunpack.c.l.bf16 %v310_v60 }
 0x5bb   : > { %1039 = vmatpush.bf16.msra.mxu3 %v1031_v0 }
 0x5bf   : > { %1040 = vmatpush.bf16.msra.mxu3 %v1030_v1  ;;  %v1142_v1 = vunpack.c.h.bf16 %v310_v60 }
 0x5c3   : > { %1041 = vmatpush.bf16.msra.mxu3 %v1029_v2 }
 0x5c7   : > { %1042 = vmatpush.bf16.msra.mxu3 %v1028_v56 }
 0x5cb   : > { %1043 = vmatpush.bf16.msra.mxu3 %v1027_v53 }
 0x5cf   : > { %1044 = vmatpush.bf16.msra.mxu3 %v1026_v50 }
 0x5d3   : > { %1045 = vmatpush.bf16.msra.mxu3 %v1025_v47 }
 0x5d6   : > { %1046 = vmatmul.bf16.vlgmr.msra.gmra.mxu3 %v1872_v34  ;;  %v1962_v34 = vld [vmem:[%s2057_s3 + $0x3] ss:$0 sm:$0xff] }
 0x5e6   : > { %1051 = vmatmul.bf16.gmra.mxu3 %v1875_v35 }
 0x5f6   : > { %1056 = vmatmul.bf16.gmra.mxu3 %v1878_v36 }
 0x606   : > { %1061 = vmatmul.bf16.gmra.mxu3 %v1881_v37 }
 0x616   : > { %1066 = vmatmul.bf16.gmra.mxu3 %v1884_v38 }
 0x626   : > { %1071 = vmatmul.bf16.gmra.mxu3 %v1887_v39 }
 0x636   : > { %1076 = vmatmul.bf16.gmra.mxu3 %v1890_v40  ;;  %v1135_v40 = vunpack.c.l.bf16 %v304_v7 }
 0x646   : > { %1081 = vmatmul.bf16.gmra.mxu3 %v1893_v43  ;;  %v1136_v43 = vunpack.c.h.bf16 %v304_v7 }
 0x659   : > { %v1047_v35 = vpop.f32.mrf.mxu3 }
 0x65a   : > { %v1048_v36 = vadd.f32 %v1962_v34, %v1047_v35 }
 0x65c   : > { %v1087_v37 = vmax.f32 %v1048_v36, 0.0 }
 0x65e   : > { %v1103_v5 = vpack.c.bf16 %v1087_v37, %v1087_v37 }
 0x660   : > { %v1119_v39 = vunpack.c.l.bf16 %v1103_v5 }
 0x661   : > { %v1049_v38 = vpop.f32.mrf.mxu3 }
 0x662   : > { %v1050_v6 = vadd.f32 %v1962_v34, %v1049_v38  ;;  %v1151_v13 = vadd.f32 %v1135_v40, %v1119_v39 }
 0x664   : > { %v1088_v9 = vmax.f32 %v1050_v6, 0.0 }
 0x666   : > { %v1104_v10 = vpack.c.bf16 %v1088_v9, %v1088_v9  ;;  %v312_v9 = vld [vmem:[%s1849_s20 + $0x20] sm:$0xff]  }
 0x668   : > { %v1120_v11 = vunpack.c.l.bf16 %v1104_v10  ;;  %v1143_v10 = vunpack.c.l.bf16 %v312_v9 }
 0x669   : > { %v1052_v12 = vpop.f32.mrf.mxu3 }
 0x66a   : > { %v1152_v14 = vadd.f32 %v1136_v43, %v1120_v11  ;;  %v1053_v15 = vadd.f32 %v1962_v34, %v1052_v12  ;;  %v1144_v11 = vunpack.c.h.bf16 %v312_v9 }
 0x66c   : > { %v1167_v16 = vpack.c.bf16 %v1152_v14, %v1151_v13  ;;  %v1089_v17 = vmax.f32 %v1053_v15, 0.0 }
 0x66e   : > { %1536 = vmatmul.msk.bf16.vlgmr.msra.gmra.mxu0 %vm376_vm0, %v1167_v16  ;;  %v1105_v19 = vpack.c.bf16 %v1089_v17, %v1089_v17 }
 0x670   : > { %v1121_v8 = vunpack.c.l.bf16 %v1105_v19 }
 0x671   : > { %v1054_v18 = vpop.f32.mrf.mxu3 }
 0x672   : > { %v1055_v20 = vadd.f32 %v1962_v34, %v1054_v18  ;;  %v1153_v28 = vadd.f32 %v1137_v23, %v1121_v8 }
 0x674   : > { %v1090_v22 = vmax.f32 %v1055_v20, 0.0 }
 0x676   : > { %v1106_v24 = vpack.c.bf16 %v1090_v22, %v1090_v22  ;;  %v314_v22 = vld [vmem:[%s1849_s20 + $0x28] sm:$0xff]  }
 0x678   : > { %v1122_v26 = vunpack.c.l.bf16 %v1106_v24  ;;  %v1145_v24 = vunpack.c.l.bf16 %v314_v22 }
 0x679   : > { %v1057_v27 = vpop.f32.mrf.mxu3 }
 0x67a   : > { %v1154_v29 = vadd.f32 %v1138_v25, %v1122_v26  ;;  %v1058_v30 = vadd.f32 %v1962_v34, %v1057_v27  ;;  %v1146_v26 = vunpack.c.h.bf16 %v314_v22 }
 0x67c   : > { %v1168_v31 = vpack.c.bf16 %v1154_v29, %v1153_v28  ;;  %v1091_v32 = vmax.f32 %v1058_v30, 0.0 }
 0x67e   : > { %1537 = vmatmul.msk.bf16.gmra.mxu0 %vm376_vm0, %v1168_v31  ;;  %v1107_v41 = vpack.c.bf16 %v1091_v32, %v1091_v32 }
 0x680   : > { %v1123_v48 = vunpack.c.l.bf16 %v1107_v41 }
 0x681   : > { %v1059_v33 = vpop.f32.mrf.mxu3 }
 0x682   : > { %v1060_v44 = vadd.f32 %v1962_v34, %v1059_v33  ;;  %v1155_v54 = vadd.f32 %v1139_v49, %v1123_v48 }
 0x684   : > { %v1092_v47 = vmax.f32 %v1060_v44, 0.0 }
 0x686   : > { %v1108_v50 = vpack.c.bf16 %v1092_v47, %v1092_v47  ;;  %v316_v47 = vld [vmem:[%s1849_s20 + $0x30] sm:$0xff]  }
 0x688   : > { %v1124_v52 = vunpack.c.l.bf16 %v1108_v50  ;;  %v1147_v50 = vunpack.c.l.bf16 %v316_v47 }
 0x689   : > { %v1062_v53 = vpop.f32.mrf.mxu3 }
 0x68a   : > { %v1156_v55 = vadd.f32 %v1140_v51, %v1124_v52  ;;  %v1063_v56 = vadd.f32 %v1962_v34, %v1062_v53  ;;  %v1148_v52 = vunpack.c.h.bf16 %v316_v47 }
 0x68c   : > { %v1169_v57 = vpack.c.bf16 %v1156_v55, %v1155_v54  ;;  %v1093_v58 = vmax.f32 %v1063_v56, 0.0 }
 0x68e   : > { %1538 = vmatmul.msk.bf16.gmra.mxu0 %vm376_vm0, %v1169_v57  ;;  %v1109_v59 = vpack.c.bf16 %v1093_v58, %v1093_v58 }
 0x690   : > { %v1125_v62 = vunpack.c.l.bf16 %v1109_v59 }
 0x691   : > { %v1064_v42 = vpop.f32.mrf.mxu3 }
 0x692   : > { %v1065_v45 = vadd.f32 %v1962_v34, %v1064_v42  ;;  %v1157_v4 = vadd.f32 %v1141_v63, %v1125_v62 }
 0x694   : > { %v1094_v61 = vmax.f32 %v1065_v45, 0.0 }
 0x696   : > { %v1110_v0 = vpack.c.bf16 %v1094_v61, %v1094_v61  ;;  %v318_v61 = vld [vmem:[%s1849_s20 + $0x38] sm:$0xff]   ;;  %s2002_s20 = scalar_lea.vmem [#allocation5], %s1392_s29  ;;  %s1693_s29 = scalar_lea.hbm %s2060_s6, 256 }
 0x697   : > { %s1297_s15 = sshll.u32 %s2002_s20, 4  ;;  %p1695_p4 = scmp.lt.s32.totalorder %s1693_s29, %s1689_s25  ;;  %s1298_s15 = int_to_ptr.vmem [resolvable:$true] %s1297_s15 }
 0x698   : > { %v1126_v2 = vunpack.c.l.bf16 %v1110_v0  ;;  %v1149_v0 = vunpack.c.l.bf16 %v318_v61 }
 0x699   : > { %v1067_v3 = vpop.f32.mrf.mxu3  ;;  %p1696_p7 = por %p1695_p4, %p1694_p3 }
 0x69a   : > { %v1158_v35 = vadd.f32 %v1142_v1, %v1126_v2  ;;  %v1068_v36 = vadd.f32 %v1962_v34, %v1067_v3  ;;  %v1150_v2 = vunpack.c.h.bf16 %v318_v61 }
 0x69b   : > { %p1697_p8 = pnand %p1696_p7, %p1692_p2 }
 0x69c   : > { %v1170_v37 = vpack.c.bf16 %v1158_v35, %v1157_v4  ;;  %v1095_v38 = vmax.f32 %v1068_v36, 0.0 }
 0x69e   : > { %1539 = vmatmul.msk.bf16.gmra.mxu0 %vm376_vm0, %v1170_v37  ;;  %v1111_v6 = vpack.c.bf16 %v1095_v38, %v1095_v38  ;;  %v1642_v37 = vld [vmem:[%s2059_s5] ss:$0 sm:$0xff] }
 0x6a0   : > { %v1127_v40 = vunpack.c.l.bf16 %v1111_v6 }
 0x6a1   : > { %v1069_v5 = vpop.f32.mrf.mxu3 }
 0x6a2   : > { %v1070_v7 = vadd.f32 %v1962_v34, %v1069_v5  ;;  %v1159_v14 = vadd.f32 %v1143_v10, %v1127_v40 }
 0x6a4   : > { %v1096_v39 = vmax.f32 %v1070_v7, 0.0 }
 0x6a6   : > { %v1112_v43 = vpack.c.bf16 %v1096_v39, %v1096_v39 }
 0x6a8   : > { %v1128_v12 = vunpack.c.l.bf16 %v1112_v43 }
 0x6a9   : > { %v1072_v13 = vpop.f32.mrf.mxu3 }
 0x6aa   : > { %v1160_v15 = vadd.f32 %v1144_v11, %v1128_v12  ;;  %v1073_v16 = vadd.f32 %v1962_v34, %v1072_v13 }
 0x6ac   : > { %v1171_v17 = vpack.c.bf16 %v1160_v15, %v1159_v14  ;;  %v1097_v18 = vmax.f32 %v1073_v16, 0.0 }
 0x6ae   : > { %1540 = vmatmul.msk.bf16.gmra.mxu0 %vm376_vm0, %v1171_v17  ;;  %v1113_v20 = vpack.c.bf16 %v1097_v18, %v1097_v18 }
 0x6b0   : > { %v1129_v23 = vunpack.c.l.bf16 %v1113_v20 }
 0x6b1   : > { %v1074_v19 = vpop.f32.mrf.mxu3 }
 0x6b2   : > { %v1075_v21 = vadd.f32 %v1962_v34, %v1074_v19  ;;  %v1161_v29 = vadd.f32 %v1145_v24, %v1129_v23 }
 0x6b4   : > { %v1098_v8 = vmax.f32 %v1075_v21, 0.0 }
 0x6b6   : > { %v1114_v25 = vpack.c.bf16 %v1098_v8, %v1098_v8 }
 0x6b8   : > { %v1130_v27 = vunpack.c.l.bf16 %v1114_v25 }
 0x6b9   : > { %v1077_v28 = vpop.f32.mrf.mxu3 }
 0x6ba   : > { %v1162_v30 = vadd.f32 %v1146_v26, %v1130_v27  ;;  %v1078_v31 = vadd.f32 %v1962_v34, %v1077_v28 }
 0x6bc   : > { %v1172_v32 = vpack.c.bf16 %v1162_v30, %v1161_v29  ;;  %v1099_v33 = vmax.f32 %v1078_v31, 0.0 }
 0x6be   : > { %1541 = vmatmul.msk.bf16.gmra.mxu0 %vm376_vm0, %v1172_v32  ;;  %v1115_v44 = vpack.c.bf16 %v1099_v33, %v1099_v33 }
 0x6c0   : > { %v1131_v49 = vunpack.c.l.bf16 %v1115_v44 }
 0x6c1   : > { %v1079_v41 = vpop.f32.mrf.mxu3 }
 0x6c2   : > { %v1080_v46 = vadd.f32 %v1962_v34, %v1079_v41  ;;  %v1163_v55 = vadd.f32 %v1147_v50, %v1131_v49 }
 0x6c4   : > { %v1100_v48 = vmax.f32 %v1080_v46, 0.0 }
 0x6c6   : > { %v1116_v51 = vpack.c.bf16 %v1100_v48, %v1100_v48 }
 0x6c8   : > { %v1132_v53 = vunpack.c.l.bf16 %v1116_v51 }
 0x6c9   : > { %v1082_v54 = vpop.f32.mrf.mxu3 }
 0x6ca   : > { %v1164_v56 = vadd.f32 %v1148_v52, %v1132_v53  ;;  %v1083_v57 = vadd.f32 %v1962_v34, %v1082_v54 }
 0x6cc   : > { %v1173_v58 = vpack.c.bf16 %v1164_v56, %v1163_v55  ;;  %v1101_v42 = vmax.f32 %v1083_v57, 0.0 }
 0x6ce   : > { %1542 = vmatmul.msk.bf16.gmra.mxu0 %vm376_vm0, %v1173_v58  ;;  %v1117_v45 = vpack.c.bf16 %v1101_v42, %v1101_v42 }
 0x6d0   : > { %v1133_v63 = vunpack.c.l.bf16 %v1117_v45 }
 0x6d1   : > { %v1084_v59 = vpop.f32.mrf.mxu3 }
 0x6d2   : > { %v1085_v60 = vadd.f32 %v1962_v34, %v1084_v59  ;;  %v1165_v4 = vadd.f32 %v1149_v0, %v1133_v63 }
 0x6d4   : > { %v1102_v62 = vmax.f32 %v1085_v60, 0.0 }
 0x6d6   : > { %v1118_v1 = vpack.c.bf16 %v1102_v62, %v1102_v62 }
 0x6d8   : > { %v1134_v3 = vunpack.c.l.bf16 %v1118_v1 }
 0x6da   : > { %v1166_v35 = vadd.f32 %v1150_v2, %v1134_v3 }
 0x6dc   : > { %v1174_v36 = vpack.c.bf16 %v1166_v35, %v1165_v4 }
 0x6de   : > { %1543 = vmatmul.msk.bf16.gmra.mxu0 %vm376_vm0, %v1174_v36 }
 0x6eb   : > { %v1228_v34 = vpop.f32.mrf.mxu0 }
 0x6ec   : > { %v1229_v38 = vadd.f32 %v1642_v37, %v1228_v34 }
 0x6ee   : > { %1268 = vst [vmem:[%s2002_s20] sm:$0xff] %v1229_v38 }
 0x6f3   : > { %v1230_v5 = vpop.f32.mrf.mxu0 }
 0x6f4   : > { %v1231_v6 = vadd.f32 %v1642_v37, %v1230_v5 }
 0x6f6   : > { %1269 = vst [vmem:[%s2002_s20 + $0x8] sm:$0xff] %v1231_v6 }
 0x6fb   : > { %v1233_v7 = vpop.f32.mrf.mxu0 }
 0x6fc   : > { %v1234_v9 = vadd.f32 %v1642_v37, %v1233_v7 }
 0x6fe   : > { %1270 = vst [vmem:[%s2002_s20 + $0x10] sm:$0xff] %v1234_v9 }
 0x703   : > { %v1235_v39 = vpop.f32.mrf.mxu0 }
 0x704   : > { %v1236_v40 = vadd.f32 %v1642_v37, %v1235_v39 }
 0x706   : > { %1271 = vst [vmem:[%s2002_s20 + $0x18] sm:$0xff] %v1236_v40 }
 0x70b   : > { %v1238_v10 = vpop.f32.mrf.mxu0 }
 0x70c   : > { %v1239_v43 = vadd.f32 %v1642_v37, %v1238_v10 }
 0x70e   : > { %1272 = vst [vmem:[%s2002_s20 + $0x20] sm:$0xff] %v1239_v43 }
 0x713   : > { %v1240_v11 = vpop.f32.mrf.mxu0 }
 0x714   : > { %v1241_v12 = vadd.f32 %v1642_v37, %v1240_v11 }
 0x716   : > { %1273 = vst [vmem:[%s2002_s20 + $0x28] sm:$0xff] %v1241_v12 }
 0x71b   : > { %v1243_v13 = vpop.f32.mrf.mxu0 }
 0x71c   : > { %v1244_v14 = vadd.f32 %v1642_v37, %v1243_v13 }
 0x71e   : > { %1274 = vst [vmem:[%s2002_s20 + $0x30] sm:$0xff] %v1244_v14 }
 0x723   : > { %v1245_v15 = vpop.f32.mrf.mxu0 }
 0x724   : > { %v1246_v16 = vadd.f32 %v1642_v37, %v1245_v15 }
 0x726   : > { %1275 = vst [vmem:[%s2002_s20 + $0x38] sm:$0xff] %v1246_v16 }
 0x72b   : > { %v1248_v17 = vpop.f32.mrf.mxu0 }
 0x72c   : > { %v1249_v18 = vadd.f32 %v1642_v37, %v1248_v17 }
 0x72e   : > { %1276 = vst [vmem:[%s2002_s20 + $0x40] sm:$0xff] %v1249_v18 }
 0x733   : > { %v1250_v19 = vpop.f32.mrf.mxu0 }
 0x734   : > { %v1251_v20 = vadd.f32 %v1642_v37, %v1250_v19 }
 0x736   : > { %1277 = vst [vmem:[%s2002_s20 + $0x48] sm:$0xff] %v1251_v20 }
 0x73b   : > { %v1253_v21 = vpop.f32.mrf.mxu0 }
 0x73c   : > { %v1254_v22 = vadd.f32 %v1642_v37, %v1253_v21 }
 0x73e   : > { %1278 = vst [vmem:[%s2002_s20 + $0x50] sm:$0xff] %v1254_v22 }
 0x743   : > { %v1255_v8 = vpop.f32.mrf.mxu0 }
 0x744   : > { %v1256_v23 = vadd.f32 %v1642_v37, %v1255_v8 }
 0x746   : > { %1279 = vst [vmem:[%s2002_s20 + $0x58] sm:$0xff] %v1256_v23 }
 0x74b   : > { %v1258_v24 = vpop.f32.mrf.mxu0 }
 0x74c   : > { %v1259_v25 = vadd.f32 %v1642_v37, %v1258_v24 }
 0x74e   : > { %1280 = vst [vmem:[%s2002_s20 + $0x60] sm:$0xff] %v1259_v25 }
 0x753   : > { %v1260_v26 = vpop.f32.mrf.mxu0 }
 0x754   : > { %v1261_v27 = vadd.f32 %v1642_v37, %v1260_v26 }
 0x756   : > { %1281 = vst [vmem:[%s2002_s20 + $0x68] sm:$0xff] %v1261_v27 }
 0x75b   : > { %v1263_v28 = vpop.f32.mrf.mxu0 }
 0x75c   : > { %v1264_v29 = vadd.f32 %v1642_v37, %v1263_v28 }
 0x75e   : > { %1282 = vst [vmem:[%s2002_s20 + $0x70] sm:$0xff] %v1264_v29 }
 0x763   : > { %v1265_v30 = vpop.f32.mrf.mxu0 }
 0x764   : > { %v1266_v31 = vadd.f32 %v1642_v37, %v1265_v30 }
 0x766   : > { %1283 = vst [vmem:[%s2002_s20 + $0x78] sm:$0xff] %v1266_v31 }
 0x767   : > { %1700 = shalt.err (!%p1697_p8)
}
 0x768   : > { %s1744_s28 = smov 128   ;;  %s1745_s20 = smov 8  }
 0x769   : > { %1588 = dma.vmem_to_hbm [thread:$0]  (%p1819_p5), %s1298_s15, 2048, %s1300_s16, %s1285_s17, %s1744_s28, %s1744_s28, %s1745_s20  }
 0x76a PF: > { %p1600_p9 = scmp.ge.s32.totalorder %s1739_s24, 2  ;;  %s1314_s11 = sand.u32 1, %s1727_s21  }
 0x76b   : > { %s1315_s12 = scalar_lea.sflag [#allocation4], %s1314_s11 }
 0x76c   : > { %p1595_p10 = pnand %p1600_p9, %p1823_p6 }
 0x76e   : > { %p1596_p11 = pneg %p1595_p10 }
 0x770   : > { %1722 = dma.done.wait (%p1596_p11), %s1315_s12, 2048  }
 0x771   : > { %1724 = vsyncadd (%p1596_p11), %s1315_s12, 4294965248  ;;  %p17_p12 = scmp.ge.s32.totalorder %s1806_s27, 4   ;;  %s2063_s21 = smov %s1731_s22 }
 0x772   : > { %s2064_s22 = smov %s1735_s23  ;;  %s2065_s23 = smov %s1817_s30 }
 0x773   : > { %s2066_s24 = smov %s1806_s27  ;;  %19 = sbr.rel (!%p17_p12) target bundleno = 4 (0x4), region = 93 }
 0x778   :  { %1321 = vsyncpa [#allocation3], 1 }
 0x779   :  { %1323 = vsyncpa [#allocation3 + $0x1], 1 }
 0x77a   :  { %1324 = vsyncpa [#allocation4], 1 }
 0x77b   :  { %1326 = vsyncpa [#allocation4 + $0x1], 1 }

</bundles_post_ra>
